<compile_context>
chip_gen: v7x
topology: tpu7x:2x2x1
jax: 0.10.0
libtpu: 0.0.40
codegen_flags: <defaults>
</compile_context>

<pallas_src>
import functools

import jax
import jax.numpy as jnp
from jax import lax
from jax.experimental import pallas as pl
from jax.experimental.pallas import tpu as pltpu

_MIB = 1024 * 1024


def _elu_plus_one(x):
    # elu(x) + 1 == x + 1 (x > 0) else exp(x).  Computed in the input dtype so
    # bf16 stays on the bf16 VPU on v6e/v7x (exp goes to the EUP either way);
    # on v5e Mosaic widens bf16 elementwise ops internally.
    one = jnp.asarray(1.0, dtype=x.dtype)
    return jnp.where(x > 0, x + one, jnp.exp(x))


def _sublane_multiple(dtype):
    # Packed-sublane multiple per dtype width (f32: 8, bf16: 16, int8/fp8: 32).
    return {4: 8, 2: 16, 1: 32}.get(jnp.dtype(dtype).itemsize, 8)


def _vmem_budget_bytes():
    # Per-generation VMEM ceiling: ~75% of physical, capped at 96 MiB.
    #   v5e/v6e (128 MiB physical) -> 96 MiB ; v7x (64 MiB per TC) -> 48 MiB.
    try:
        cap = int(pltpu.get_tpu_info().vmem_capacity_bytes)
    except Exception:  # interpret mode / older jax: assume the tightest (v7x).
        cap = 64 * _MIB
    return min((cap * 3) // 4, 96 * _MIB)


def _pick_rows(n_rows, row_bytes, sublane, block_cap_bytes):
    """Rows per streamed block: the largest sublane-multiple within the byte cap."""
    if n_rows * row_bytes <= block_cap_bytes:
        return n_rows
    t = (block_cap_bytes // max(1, row_bytes)) // sublane * sublane
    return min(n_rows, max(sublane, t))


# ---------------------------------------------------------------------------
# Phase A: accumulate KV = K^T V and ksum = sum_n K over sequence tiles.
# Inputs are in the lane-dense "wide" layout: `groups` original rows per row.
# ---------------------------------------------------------------------------
def _kv_accum_kernel(k_ref, v_ref, kv_ref, ksum_ref, *, groups, dim_k, dim_v):
    t = pl.program_id(2)

    @pl.when(t == 0)
    def _init():
        kv_ref[...] = jnp.zeros_like(kv_ref)
        ksum_ref[...] = jnp.zeros_like(ksum_ref)

    k = k_ref[0]                              # (tk, groups*dim_k)
    v = v_ref[0]                              # (tk, groups*dim_v)
    ke = _elu_plus_one(k)                     # feature map in the input dtype

    # ksum accumulated in f32, in the wide layout; the (tiny) wrapper epilogue
    # folds the groups together and appends it to KV as the augmented column.
    ksum_ref[0, 0] += jnp.sum(ke, axis=0, keepdims=True, dtype=jnp.float32)

    # KV += K^T @ V, contracting the sequence axis (no explicit transpose).
    acc = kv_ref[0, 0]                        # (dim_k, dim_v), f32, VMEM-resident
    for g in range(groups):                   # static unroll over lane groups
        kg = ke[:, g * dim_k:(g + 1) * dim_k] if groups > 1 else ke
        vg = v[:, g * dim_v:(g + 1) * dim_v] if groups > 1 else v
        acc = acc + lax.dot_general(
            kg, vg,
            dimension_numbers=(((0,), (0,)), ((), ())),
            preferred_element_type=jnp.float32)
    kv_ref[0, 0] = acc


# ---------------------------------------------------------------------------
# Phase B: out = (Q @ KV) * 1/(Q @ ksum), per q-tile, single fused MXU pass.
# ---------------------------------------------------------------------------
def _apply_kernel(q_ref, kv_ref, o_ref, *, groups, dim_k, dim_v):
    q = q_ref[0]                              # (tq, groups*dim_k)
    qe = _elu_plus_one(q)
    kv = kv_ref[0]                            # (dim_k, dim_v + 1), f32
    # Keep the f32 KV/denominator path when the inputs are f32; cast for bf16.
    kv_op = kv if q.dtype == jnp.float32 else kv.astype(q.dtype)

    parts = []
    for g in range(groups):                   # static unroll over lane groups
        qg = qe[:, g * dim_k:(g + 1) * dim_k] if groups > 1 else qe
        # One MXU pass gives both the numerator and the denominator column.
        res = jnp.dot(qg, kv_op, preferred_element_type=jnp.float32)  # (tq, dv+1)
        z = pl.reciprocal(res[:, dim_v:dim_v + 1], approx=True)       # EUP slot
        parts.append(res[:, :dim_v] * z)
    out = parts[0] if groups == 1 else jnp.concatenate(parts, axis=-1)
    o_ref[0] = out.astype(o_ref.dtype)        # lane-dense (>=128-wide) store


def linear_attention(Q, K, V, mask=None):
    """Pallas linear attention. Q, K: (B, N, Dk); V: (B, N, Dv)."""
    if mask is not None:
        # TODO(synk): masked-K path (K = (elu(K)+1) * mask[..., None]) not wired in;
        # the reference default (mask=None) path is implemented.
        raise NotImplementedError("mask is not supported in the Pallas kernel")

    B, N, Dk = Q.shape
    Dv = V.shape[-1]
    in_dtype = Q.dtype
    itemsize = jnp.dtype(in_dtype).itemsize
    sublane = _sublane_multiple(in_dtype)

    # Lane-dense grouping: fold `groups` consecutive sequence positions onto the
    # lane axis (pure row-major reshapes in the wrapper, no copies/transposes).
    if Dk <= 128 and Dv <= 128 and 128 % Dk == 0 and 128 % Dv == 0:
        groups = max(1, 128 // max(Dk, Dv))
    else:
        groups = 1
    dva = Dv + 1

    budget = _vmem_budget_bytes()
    block_cap = min(4 * _MIB, budget // 6)    # ~4 MiB per streamed block

    # Sequence tiling in "wide rows" (= `groups` original positions per row).
    n_wide_raw = pl.cdiv(N, groups)
    row_bytes = groups * max(Dk, Dv) * itemsize
    t_rows = _pick_rows(n_wide_raw, row_bytes, sublane, block_cap)
    n_wide = pl.cdiv(n_wide_raw, t_rows) * t_rows
    n_pad = n_wide * groups

    if n_pad != N:
        pad = n_pad - N
        # K pad rows use a large negative value -> elu(x)+1 == exp(x) == 0 exactly,
        # so they contribute nothing to KV/ksum; Q/V pad rows are sliced away.
        Q = jnp.pad(Q, ((0, 0), (0, pad), (0, 0)))
        K = jnp.pad(K, ((0, 0), (0, pad), (0, 0)), constant_values=-1e4)
        V = jnp.pad(V, ((0, 0), (0, pad), (0, 0)))

    q_w = Q.reshape(B, n_wide, groups * Dk)   # free row-major reshapes
    k_w = K.reshape(B, n_wide, groups * Dk)
    v_w = V.reshape(B, n_wide, groups * Dv)

    n_tiles = n_wide // t_rows
    # Split the sequence reduction across a leading parallel axis so both v7x
    # TensorCores are busy even when B is small; combined by a tiny XLA sum.
    splits = 2 if (n_tiles >= 2 and n_tiles % 2 == 0) else 1
    tiles_per_split = n_tiles // splits

    # ---- Phase A: partial KV (Dk, Dv) and wide ksum per (batch, split). ----
    kv_partial, ksum_partial = pl.pallas_call(
        functools.partial(_kv_accum_kernel, groups=groups, dim_k=Dk, dim_v=Dv),
        out_shape=(
            jax.ShapeDtypeStruct((B, splits, Dk, Dv), jnp.float32),
            jax.ShapeDtypeStruct((B, splits, 1, groups * Dk), jnp.float32),
        ),
        grid_spec=pltpu.PrefetchScalarGridSpec(
            num_scalar_prefetch=0,
            grid=(splits, B, tiles_per_split),
            in_specs=[
                pl.BlockSpec((1, t_rows, groups * Dk),
                             lambda s, b, t: (b, s * tiles_per_split + t, 0)),
                pl.BlockSpec((1, t_rows, groups * Dv),
                             lambda s, b, t: (b, s * tiles_per_split + t, 0)),
            ],
            out_specs=[
                pl.BlockSpec((1, 1, Dk, Dv), lambda s, b, t: (b, s, 0, 0)),
                pl.BlockSpec((1, 1, 1, groups * Dk), lambda s, b, t: (b, s, 0, 0)),
            ],
        ),
        compiler_params=pltpu.CompilerParams(
            dimension_semantics=("parallel", "parallel", "arbitrary"),
            vmem_limit_bytes=budget),
    )(k_w, v_w)

    # Tiny XLA epilogue: combine splits/groups and build KV_aug = [KV | ksum^T].
    kv = kv_partial.sum(axis=1)                                   # (B, Dk, Dv)
    ksum = ksum_partial.sum(axis=1).reshape(B, groups, Dk).sum(axis=1)  # (B, Dk)
    kv_aug = jnp.concatenate([kv, ksum[:, :, None]], axis=-1)     # (B, Dk, Dv+1)

    # ---- Phase B: apply to Q tiles (both grid axes parallel). ----
    out_w = pl.pallas_call(
        functools.partial(_apply_kernel, groups=groups, dim_k=Dk, dim_v=Dv),
        out_shape=jax.ShapeDtypeStruct((B, n_wide, groups * Dv), in_dtype),
        grid_spec=pltpu.PrefetchScalarGridSpec(
            num_scalar_prefetch=0,
            grid=(B, n_tiles),
            in_specs=[
                pl.BlockSpec((1, t_rows, groups * Dk), lambda b, i: (b, i, 0)),
                pl.BlockSpec((1, Dk, dva), lambda b, i: (b, 0, 0)),
            ],
            out_specs=pl.BlockSpec((1, t_rows, groups * Dv), lambda b, i: (b, i, 0)),
        ),
        compiler_params=pltpu.CompilerParams(
            dimension_semantics=("parallel", "parallel"),
            vmem_limit_bytes=budget),
    )(q_w, kv_aug)

    out = out_w.reshape(B, n_pad, Dv)         # free un-grouping reshape
    if n_pad != N:
        out = out[:, :N, :]
    # Match the PyTorch module's (output, attn_weights=None) return signature.
    return out, None


def _linear_attention_ref(Q, K, V):
    """Pure-JAX reference (mirrors the PyTorch math)."""
    Qe = jax.nn.elu(Q) + 1.0
    Ke = jax.nn.elu(K) + 1.0
    KV = jnp.einsum("bnd,bnv->bdv", Ke, V)
    Z = 1.0 / jnp.einsum("bnd,bd->bn", Qe, Ke.sum(axis=-2))[..., None]
    return jnp.einsum("bnd,bdv->bnv", Qe, KV) * Z


if __name__ == "__main__":
    key = jax.random.PRNGKey(0)
    kq, kk, kv_key = jax.random.split(key, 3)

    B, N, Dk, Dv = 2, 8, 32, 32   # dim_k = 32
    Q = jax.random.normal(kq, (B, N, Dk), dtype=jnp.float32)
    K = jax.random.normal(kk, (B, N, Dk), dtype=jnp.float32)
    V = jax.random.normal(kv_key, (B, N, Dv), dtype=jnp.float32)

    out, attn = linear_attention(Q, K, V)
    out = jax.block_until_ready(out)

    ref = _linear_attention_ref(Q, K, V)
    assert out.shape == (B, N, Dv)
    assert attn is None
    # f32 path keeps KV / the denominator in f32 end-to-end; the remaining
    # deviation vs the exact reference comes from the approximate (EUP)
    # reciprocal used for the normalizer.
    assert jnp.allclose(out, ref, atol=1e-2, rtol=1e-2), "mismatch vs reference"

    print("KERNEL_OK")
</pallas_src>

<mosaic_0001>
module attributes {stable_mosaic.version = 11 : i64} {
  func.func @_kv_accum_kernel(%arg0: i32, %arg1: i32, %arg2: i32, %arg3: memref<1x2x128xf32, #tpu.memory_space<vmem>>, %arg4: memref<1x2x128xf32, #tpu.memory_space<vmem>>, %arg5: memref<1x1x32x32xf32, #tpu.memory_space<vmem>>, %arg6: memref<1x1x1x128xf32, #tpu.memory_space<vmem>>) attributes {dimension_semantics = [#tpu.dimension_semantics<parallel>, #tpu.dimension_semantics<parallel>, #tpu.dimension_semantics<arbitrary>], iteration_bounds = array<i64: 1, 2, 1>, scalar_prefetch = 0 : i64, scratch_operands = 0 : i64, tpu.core_type = #tpu.core_type<tc>, window_params = [{transform_indices = @transform_0, window_bounds = array<i64: 1, 2, 128>}, {transform_indices = @transform_1, window_bounds = array<i64: 1, 2, 128>}, {transform_indices = @transform_2, window_bounds = array<i64: 1, 1, 32, 32>}, {transform_indices = @transform_3, window_bounds = array<i64: 1, 1, 1, 128>}]} {
    %c0_i32 = arith.constant 0 : i32
    %0 = arith.cmpi eq, %arg2, %c0_i32 : i32
    %1 = arith.extui %0 : i1 to i32
    %c0_i32_0 = arith.constant 0 : i32
    %2 = arith.cmpi ne, %1, %c0_i32_0 : i32
    scf.if %2 {
      %cst_28 = arith.constant 0.000000e+00 : f32
      %42 = vector.broadcast %cst_28 : f32 to vector<1x1x32x32xf32>
      %c0_29 = arith.constant 0 : index
      %c0_30 = arith.constant 0 : index
      %c0_31 = arith.constant 0 : index
      %c0_32 = arith.constant 0 : index
      %43 = vector.load %arg5[%c0_29, %c0_30, %c0_31, %c0_32] : memref<1x1x32x32xf32, #tpu.memory_space<vmem>>, vector<1x1x32x32xf32>
      tpu.vector_store %arg5[%c0_29, %c0_30, %c0_31, %c0_32], %42 {strides = array<i32>} : memref<1x1x32x32xf32, #tpu.memory_space<vmem>>, vector<1x1x32x32xf32>,
      %cst_33 = arith.constant 0.000000e+00 : f32
      %44 = vector.broadcast %cst_33 : f32 to vector<1x1x1x128xf32>
      %c0_34 = arith.constant 0 : index
      %c0_35 = arith.constant 0 : index
      %c0_36 = arith.constant 0 : index
      %c0_37 = arith.constant 0 : index
      %45 = vector.load %arg6[%c0_34, %c0_35, %c0_36, %c0_37] : memref<1x1x1x128xf32, #tpu.memory_space<vmem>>, vector<1x1x1x128xf32>
      tpu.vector_store %arg6[%c0_34, %c0_35, %c0_36, %c0_37], %44 {strides = array<i32>} : memref<1x1x1x128xf32, #tpu.memory_space<vmem>>, vector<1x1x1x128xf32>,
    } else {
    }
    %c0 = arith.constant 0 : index
    %c0_1 = arith.constant 0 : index
    %c0_2 = arith.constant 0 : index
    %3 = vector.load %arg3[%c0, %c0_1, %c0_2] : memref<1x2x128xf32, #tpu.memory_space<vmem>>, vector<1x2x128xf32>
    %4 = vector.shape_cast %3 : vector<1x2x128xf32> to vector<2x128xf32>
    %c0_3 = arith.constant 0 : index
    %c0_4 = arith.constant 0 : index
    %c0_5 = arith.constant 0 : index
    %5 = vector.load %arg4[%c0_3, %c0_4, %c0_5] : memref<1x2x128xf32, #tpu.memory_space<vmem>>, vector<1x2x128xf32>
    %6 = vector.shape_cast %5 : vector<1x2x128xf32> to vector<2x128xf32>
    %cst = arith.constant 0.000000e+00 : f32
    %7 = vector.broadcast %cst : f32 to vector<2x128xf32>
    %8 = arith.cmpf ogt, %4, %7 : vector<2x128xf32>
    %cst_6 = arith.constant 1.000000e+00 : f32
    %9 = vector.broadcast %cst_6 : f32 to vector<2x128xf32>
    %10 = arith.addf %4, %9 : vector<2x128xf32>
    %11 = math.exp %4 : vector<2x128xf32>
    %12 = arith.select %8, %10, %11 : vector<2x128xi1>, vector<2x128xf32>
    %c0_7 = arith.constant 0 : index
    %c0_8 = arith.constant 0 : index
    %c0_9 = arith.constant 0 : index
    %c0_10 = arith.constant 0 : index
    %13 = vector.load %arg6[%c0_7, %c0_8, %c0_9, %c0_10] : memref<1x1x1x128xf32, #tpu.memory_space<vmem>>, vector<1x1x1x128xf32>
    %14 = vector.shape_cast %13 : vector<1x1x1x128xf32> to vector<1x128xf32>
    %cst_11 = arith.constant dense<0.000000e+00> : vector<128xf32>
    %15 = vector.multi_reduction <add>, %12, %cst_11 [0] : vector<2x128xf32> to vector<128xf32>
    %16 = vector.shape_cast %15 : vector<128xf32> to vector<1x128xf32>
    %17 = arith.addf %14, %16 : vector<1x128xf32>
    %c0_12 = arith.constant 0 : index
    %c0_13 = arith.constant 0 : index
    %c0_14 = arith.constant 0 : index
    %c0_15 = arith.constant 0 : index
    %18 = vector.load %arg6[%c0_12, %c0_13, %c0_14, %c0_15] : memref<1x1x1x128xf32, #tpu.memory_space<vmem>>, vector<1x1x1x128xf32>
    %19 = vector.shape_cast %18 : vector<1x1x1x128xf32> to vector<1x128xf32>
    %20 = vector.shape_cast %17 : vector<1x128xf32> to vector<1x1x1x128xf32>
    tpu.vector_store %arg6[%c0_12, %c0_13, %c0_14, %c0_15], %20 {strides = array<i32>} : memref<1x1x1x128xf32, #tpu.memory_space<vmem>>, vector<1x1x1x128xf32>,
    %c0_16 = arith.constant 0 : index
    %c0_17 = arith.constant 0 : index
    %c0_18 = arith.constant 0 : index
    %c0_19 = arith.constant 0 : index
    %21 = vector.load %arg5[%c0_16, %c0_17, %c0_18, %c0_19] : memref<1x1x32x32xf32, #tpu.memory_space<vmem>>, vector<1x1x32x32xf32>
    %22 = vector.shape_cast %21 : vector<1x1x32x32xf32> to vector<32x32xf32>
    %23 = vector.extract_strided_slice %12 {offsets = [0, 0], sizes = [2, 32], strides = [1, 1]} : vector<2x128xf32> to vector<2x32xf32>
    %24 = vector.extract_strided_slice %6 {offsets = [0, 0], sizes = [2, 32], strides = [1, 1]} : vector<2x128xf32> to vector<2x32xf32>
    %cst_20 = arith.constant dense<0.000000e+00> : vector<32x32xf32>
    %25 = tpu.matmul %23, %24, %cst_20 {dimension_numbers = #tpu.dot_dimension_numbers<[0], [0], [1], [1], [0, 1, 1, 1], [], []>} : vector<2x32xf32>, vector<2x32xf32>, vector<32x32xf32> -> vector<32x32xf32>
    %26 = arith.addf %22, %25 : vector<32x32xf32>
    %27 = vector.extract_strided_slice %12 {offsets = [0, 32], sizes = [2, 32], strides = [1, 1]} : vector<2x128xf32> to vector<2x32xf32>
    %28 = vector.extract_strided_slice %6 {offsets = [0, 32], sizes = [2, 32], strides = [1, 1]} : vector<2x128xf32> to vector<2x32xf32>
    %cst_21 = arith.constant dense<0.000000e+00> : vector<32x32xf32>
    %29 = tpu.matmul %27, %28, %cst_21 {dimension_numbers = #tpu.dot_dimension_numbers<[0], [0], [1], [1], [0, 1, 1, 1], [], []>} : vector<2x32xf32>, vector<2x32xf32>, vector<32x32xf32> -> vector<32x32xf32>
    %30 = arith.addf %26, %29 : vector<32x32xf32>
    %31 = vector.extract_strided_slice %12 {offsets = [0, 64], sizes = [2, 32], strides = [1, 1]} : vector<2x128xf32> to vector<2x32xf32>
    %32 = vector.extract_strided_slice %6 {offsets = [0, 64], sizes = [2, 32], strides = [1, 1]} : vector<2x128xf32> to vector<2x32xf32>
    %cst_22 = arith.constant dense<0.000000e+00> : vector<32x32xf32>
    %33 = tpu.matmul %31, %32, %cst_22 {dimension_numbers = #tpu.dot_dimension_numbers<[0], [0], [1], [1], [0, 1, 1, 1], [], []>} : vector<2x32xf32>, vector<2x32xf32>, vector<32x32xf32> -> vector<32x32xf32>
    %34 = arith.addf %30, %33 : vector<32x32xf32>
    %35 = vector.extract_strided_slice %12 {offsets = [0, 96], sizes = [2, 32], strides = [1, 1]} : vector<2x128xf32> to vector<2x32xf32>
    %36 = vector.extract_strided_slice %6 {offsets = [0, 96], sizes = [2, 32], strides = [1, 1]} : vector<2x128xf32> to vector<2x32xf32>
    %cst_23 = arith.constant dense<0.000000e+00> : vector<32x32xf32>
    %37 = tpu.matmul %35, %36, %cst_23 {dimension_numbers = #tpu.dot_dimension_numbers<[0], [0], [1], [1], [0, 1, 1, 1], [], []>} : vector<2x32xf32>, vector<2x32xf32>, vector<32x32xf32> -> vector<32x32xf32>
    %38 = arith.addf %34, %37 : vector<32x32xf32>
    %c0_24 = arith.constant 0 : index
    %c0_25 = arith.constant 0 : index
    %c0_26 = arith.constant 0 : index
    %c0_27 = arith.constant 0 : index
    %39 = vector.load %arg5[%c0_24, %c0_25, %c0_26, %c0_27] : memref<1x1x32x32xf32, #tpu.memory_space<vmem>>, vector<1x1x32x32xf32>
    %40 = vector.shape_cast %39 : vector<1x1x32x32xf32> to vector<32x32xf32>
    %41 = vector.shape_cast %38 : vector<32x32xf32> to vector<1x1x32x32xf32>
    tpu.vector_store %arg5[%c0_24, %c0_25, %c0_26, %c0_27], %41 {strides = array<i32>} : memref<1x1x32x32xf32, #tpu.memory_space<vmem>>, vector<1x1x32x32xf32>,
    return
  }
  func.func @transform_0(%arg0: i32, %arg1: i32, %arg2: i32) -> (i32, i32, i32) {
    %c1_i32 = arith.constant 1 : i32
    %0 = arith.muli %arg0, %c1_i32 : i32
    %1 = arith.addi %0, %arg2 : i32
    %c0_i32 = arith.constant 0 : i32
    %c0_i32_0 = arith.constant 0 : i32
    return %arg1, %1, %c0_i32 : i32, i32, i32
  }
  func.func @transform_1(%arg0: i32, %arg1: i32, %arg2: i32) -> (i32, i32, i32) {
    %c1_i32 = arith.constant 1 : i32
    %0 = arith.muli %arg0, %c1_i32 : i32
    %1 = arith.addi %0, %arg2 : i32
    %c0_i32 = arith.constant 0 : i32
    %c0_i32_0 = arith.constant 0 : i32
    return %arg1, %1, %c0_i32 : i32, i32, i32
  }
  func.func @transform_2(%arg0: i32, %arg1: i32, %arg2: i32) -> (i32, i32, i32, i32) {
    %c0_i32 = arith.constant 0 : i32
    %c0_i32_0 = arith.constant 0 : i32
    %c0_i32_1 = arith.constant 0 : i32
    return %arg1, %arg0, %c0_i32, %c0_i32_0 : i32, i32, i32, i32
  }
  func.func @transform_3(%arg0: i32, %arg1: i32, %arg2: i32) -> (i32, i32, i32, i32) {
    %c0_i32 = arith.constant 0 : i32
    %c0_i32_0 = arith.constant 0 : i32
    %c0_i32_1 = arith.constant 0 : i32
    return %arg1, %arg0, %c0_i32, %c0_i32_0 : i32, i32, i32, i32
  }
}

</mosaic_0001>

<bundles_post_ra>
// kernel: tpu_custom_call.1
= control target key start
LH: loop header
LB: loop body
LE: loop exit
PB: predicated region body
PF: predicated region fallthrough
CT: control target
= control target key end

     0   :  { %9 = vsyncpa [#allocation3], 0  ;;  %s1742_s0 = inlined_call_operand.hbm [shape: f32[2,2,128], index: 0, kind: input, shape index: {}]   ;;  %s1743_s1 = inlined_call_operand.hbm [shape: f32[2,2,128], index: 1, kind: input, shape index: {}]   ;;  %s1744_s2 = inlined_call_operand.hbm [shape: f32[2,1,32,32], index: 2, kind: output, shape index: {0}]   ;;  %s1745_s3 = inlined_call_operand.hbm [shape: f32[2,1,1,128], index: 3, kind: output, shape index: {1}]  }
   0x1   :  { %11 = vsyncpa [#allocation3 + $0x1], 0 }
   0x2   :  { %12 = vsyncpa [#allocation6], 0 }
   0x3   :  { %14 = vsyncpa [#allocation6 + $0x1], 0 }
   0x4   :  { %15 = vsyncpa [#allocation4], 0 }
   0x5   :  { %17 = vsyncpa [#allocation4 + $0x1], 0 }
   0x6   :  { %18 = vsyncpa [#allocation9], 0 }
   0x7   :  { %20 = vsyncpa [#allocation9 + $0x1], 0  ;;  %s1439_s12 = smov 0   ;;  %s1441_s13 = smov 0  }
   0x8   :  { %s1443_s14 = smov 0   ;;  %s1445_s15 = smov 0  }
   0x9   :  { %s1447_s16 = smov 0   ;;  %s1449_s17 = smov 0  }
   0xa LB: > { %s1042_s18 = sadd.s32 4294967295, %s1407_s17   ;;  %s1043_s19 = sadd.s32 4294967294, %s1407_s17   ;;  %s1407_s17 = sphi %s1449_s17, %s26_s17   ;;  %s1403_s16 = sphi %s1447_s16, %s1765_s16   ;;  %s1399_s15 = sphi %s1445_s15, %s1764_s15   ;;  %s1395_s14 = sphi %s1443_s14, %s1763_s14   ;;  %s1391_s13 = sphi %s1441_s13, %s1762_s13   ;;  %s1387_s12 = sphi %s1439_s12, %s1761_s12  }
   0xb   : > { %s41_s20 = sadd.s32 1, %s1403_s16  ;;  %s56_s21 = sadd.s32 1, %s1395_s14 }
   0xc   : > { %p43_p0 = scmp.ge.s32.totalorder %s41_s20, 2  ;;  %p63_p1 = scmp.ne.s32.totalorder %s1395_s14, %s1391_s13 }
   0xd   : > { %p64_p2 = scmp.eq.s32.totalorder %s1407_s17, 0  ;;  %p69_p3 = scmp.ne.s32.totalorder %s1391_s13, %s1387_s12 }
   0xe   : > { %s1767_s20 = smov (%p43_p0, %s41_s20), 0  ;;  %p70_p5 = scmp.eq.s32.totalorder %s1042_s18, 0 }
   0xf   : > { %p1480_p4 = por %p64_p2, %p63_p1  ;;  %s51_s23 = ssub.s32 %s1403_s16, %s1767_s20 }
  0x10   : > { %p125_p6 = scmp.eq.s32.totalorder %s1042_s18, 1  ;;  %p54_p7 = scmp.eq.s32.totalorder %s51_s23, 0 }
  0x11   : > { %p1486_p8 = por %p70_p5, %p69_p3  ;;  %p131_p10 = scmp.eq.s32.totalorder %s1043_s19, 1 }
  0x12   : > { %p1490_p9 = por %p125_p6, %p63_p1  ;;  %p1171_p13 = scmp.lt.s32.totalorder %s1407_s17, 2 }
  0x13   : > { %s1749_s24 = scalar_select %p1486_p8, 1, 0 }
  0x14   : > { %s1750_s25 = scalar_select %p1490_p9, 1, 0 }
  0x15   : > { %s1495_s26 = scalar_select %p54_p7, %s1395_s14, %s56_s21  }
  0x16   : > { %p1497_p11 = por %p131_p10, %p69_p3  ;;  %s1504_s28 = sand.u32 1, %s1395_s14  }
  0x17   : > { %s1046_s29 = sshll.u32 %s1504_s28, 1  ;;  %s1047_s30 = sshll.u32 %s1403_s16, 5 }
  0x18   : > { %s1751_s27 = scalar_select %p1497_p11, 1, 0 }
  0x19   : > { %s1513_s6 = scalar_lea.hbm %s1742_s0, %s1047_s30  ;;  %s183_s7 = scalar_lea.vmem [#allocation2], %s1046_s29 }
  0x1a   : > { %s192_s8 = sshll.u32 %s183_s7, 4  ;;  %p1521_p0 = pnand %p1171_p13, %p1480_p4  ;;  %s1517_s8 = int_to_ptr.vmem [resolvable:$true] %s192_s8 }
  0x1b   : > { %s180_s10 = scalar_lea.sflag [#allocation3], %s1504_s28  ;;  %s1229_s11 = scalar_lea.hbm %s1513_s6, 32 }
  0x1c   : > { %p1230_p3 = scmp.ne.s32.totalorder %s1513_s6, %s1229_s11  ;;  %p1231_p5 = pneg %p1521_p0 }
  0x1d   : > { %s1234_s21 = scalar_lea.hbm %s1742_s0, 64  ;;  %p1235_p4 = scmp.lt.u32.totalorder %s1513_s6, %s1742_s0 }
  0x1e   : > { %p1232_p6 = pnand %p1231_p5, %p1230_p3  ;;  %p1236_p10 = scmp.lt.u32.totalorder %s1234_s21, %s1229_s11 }
  0x1f   : > { %p1238_p12 = scmp.lt.u32.totalorder %s1229_s11, %s1513_s6 }
  0x20   : > { %p1233_p7 = pneg %p1232_p6  ;;  %p1237_p13 = por %p1236_p10, %p1235_p4 }
  0x22   : > { %p1239_p1 = por %p1238_p12, %p1237_p13 }
  0x24   : > { %p1240_p2 = pnand %p1239_p1, %p1233_p7 }
  0x26   : > { %1243 = shalt.err (!%p1240_p2)
}
  0x27   : > { %s1244_s4 = scalar_lea.vmem %s1517_s8, 32  ;;  %s1409_s5 = smov [#allocation2]  }
  0x28   : > { %p1245_p3 = scmp.ne.s32.totalorder %s1517_s8, %s1244_s4  ;;  %s1249_s7 = sshll.u32 %s1409_s5, 4  ;;  %s1250_s7 = int_to_ptr.vmem [resolvable:$false] %s1249_s7 }
  0x29   : > { %s1251_s18 = scalar_lea.vmem %s1250_s7, 64  ;;  %p1252_p9 = scmp.lt.s32.totalorder %s1517_s8, %s1250_s7 }
  0x2a   : > { %p1247_p6 = pnand %p1245_p3, %p1231_p5  ;;  %p1253_p4 = scmp.lt.s32.totalorder %s1251_s18, %s1244_s4 }
  0x2c   : > { %p1248_p11 = pneg %p1247_p6  ;;  %p1254_p10 = por %p1253_p4, %p1252_p9 }
  0x2e   : > { %p1255_p12 = pnand %p1254_p10, %p1248_p11 }
  0x30   : > { %1258 = shalt.err (!%p1255_p12)
}
  0x31   : > { %1160 = dma.hbm_to_vmem [thread:$0]  (!%p1521_p0), %s1513_s6, 32, %s1517_s8, %s180_s10  }
  0x32   : > { %p1753_p1 = scmp.lt.s32.totalorder %s1407_s17, 3  ;;  %p1754_p2 = scmp.ge.s32.totalorder %s1407_s17, 1 }
  0x33   : > { %s1566_s22 = scalar_lea.hbm %s1743_s1, %s1047_s30  ;;  %s203_s23 = scalar_lea.vmem [#allocation5], %s1046_s29 }
  0x34   : > { %p1557_p7 = pnand %p1754_p2, %p1753_p1  ;;  %s212_s4 = sshll.u32 %s203_s23, 4  ;;  %s213_s4 = int_to_ptr.vmem [resolvable:$true] %s212_s4 }
  0x35   : > { %s200_s6 = scalar_lea.sflag [#allocation6], %s1504_s28  ;;  %s1259_s8 = scalar_lea.hbm %s1566_s22, 32 }
  0x36   : > { %s1755_s11 = scalar_select %p1557_p7, 1, 0 }
  0x37   : > { %p1260_p9 = scmp.ne.s32.totalorder %s1566_s22, %s1259_s8  ;;  %s1264_s30 = scalar_lea.hbm %s1743_s1, 64 }
  0x38   : > { %p1265_p3 = scmp.lt.u32.totalorder %s1566_s22, %s1743_s1  ;;  %p1266_p6 = scmp.lt.u32.totalorder %s1264_s30, %s1259_s8 }
  0x39   : > { %p1262_p11 = pnand %p1260_p9, %p1231_p5  ;;  %p1268_p10 = scmp.lt.u32.totalorder %s1259_s8, %s1566_s22 }
  0x3a   : > { %p1267_p4 = por %p1266_p6, %p1265_p3 }
  0x3b   : > { %p1263_p13 = pneg %p1262_p11 }
  0x3c   : > { %p1269_p12 = por %p1268_p10, %p1267_p4 }
  0x3e   : > { %p1270_p1 = pnand %p1269_p12, %p1263_p13 }
  0x40   : > { %1273 = shalt.err (!%p1270_p1)
}
  0x41   : > { %s1274_s28 = scalar_lea.vmem %s213_s4, 32  ;;  %s1410_s29 = smov [#allocation5]  }
  0x42   : > { %p1275_p2 = scmp.ne.s32.totalorder %s213_s4, %s1274_s28  ;;  %s1279_s19 = sshll.u32 %s1410_s29, 4  ;;  %s1280_s19 = int_to_ptr.vmem [resolvable:$false] %s1279_s19 }
  0x43   : > { %s1281_s21 = scalar_lea.vmem %s1280_s19, 64  ;;  %p1282_p8 = scmp.lt.s32.totalorder %s213_s4, %s1280_s19 }
  0x44   : > { %p1277_p9 = pnand %p1275_p2, %p1231_p5  ;;  %p1283_p7 = scmp.lt.s32.totalorder %s1281_s21, %s1274_s28 }
  0x46   : > { %p1278_p11 = pneg %p1277_p9  ;;  %p1284_p3 = por %p1283_p7, %p1282_p8 }
  0x48   : > { %p1285_p6 = pnand %p1284_p3, %p1278_p11 }
  0x4a   : > { %1288 = shalt.err (!%p1285_p6)
}
  0x4b   : > { %1163 = dma.hbm_to_vmem [thread:$0]  (!%p1521_p0), %s1566_s22, 32, %s213_s4, %s200_s6  }
  0x4c   : > { %p1756_p13 = scmp.ne.s32.totalorder %s1755_s11, 0 }
  0x4d   : > { %s1593_s23 = sand.u32 (!%p1756_p13), 1, %s1391_s13   ;;  %p1757_p5 = scmp.ne.s32.totalorder (!%p1756_p13), %s1749_s24, 0 }
  0x4e   : > { %221 = sbr.rel (%p1756_p13) target bundleno = 605 (0x25d), region = 28  ;;  %s1051_s8 = sshll.u32 (!%p1756_p13), %s1593_s23, 1 }
  0x4f   : > { %s224_s10 = scalar_lea.sflag (!%p1756_p13), [#allocation3], %s1593_s23  ;;  %s227_s5 = scalar_lea.vmem (!%p1756_p13), [#allocation2], %s1051_s8 }
  0x55   : > { %1370 = dma.done.wait (%p1757_p5), %s224_s10, 32  }
  0x56   : > { %1372 = vsyncadd (%p1757_p5), %s224_s10, 4294967264  ;;  %s233_s9 = scalar_lea.sflag [#allocation6], %s1593_s23  ;;  %s236_s22 = scalar_lea.vmem [#allocation5], %s1051_s8 }
  0x57   : > { %1374 = dma.done.wait (%p1757_p5), %s233_s9, 32  }
  0x58   : > { %1376 = vsyncadd (%p1757_p5), %s233_s9, 4294967264  ;;  %v280_v0 = vld [vmem:[%s227_s5] sm:$0x3]  ;;  %vm288_vm0 = vcmask 1041408   ;;  %v281_v1 = vld [vmem:[%s236_s22] sm:$0x3] }
  0x59   : > { %v284_v2 = vmul.f32 1.442695, %v280_v0  ;;  %s1411_s11 = smov 64   ;;  %1101 = vmatprep.subr.msk.mxu1 %vm288_vm0, %v281_v1  ;;  %v283_v3 = vadd.f32 1.0, %v280_v0  ;;  %vm282_vm1 = vcmp.gt.f32.partialorder %v280_v0, 0.0  ;;  %s1412_s24 = smov 32  }
  0x5a   : > { %615 = vrot.lane.b32.xlu1 %v281_v1, %s1411_s11  ;;  %1102 = vmatpush3.msk.msra.mxu1 %vm288_vm0, %v281_v1  ;;  %s1413_s4 = smov 96   ;;  %s1053_s6 = sshll.u32 %s1593_s23, 5  ;;  %vm274_vm2 = vcmask 261120   ;;  %v1414_v12 = vmov 0.0   ;;  %vm334_vm3 = vcmask 15360  }
  0x5b   : > { %1227 = vpow2.f32 %v284_v2  ;;  %s1619_s30 = scalar_lea.vmem [#allocation7], %s1053_s6  ;;  %s267_s7 = scalar_lea.vmem [#allocation8], %s1593_s23 }
  0x5c   : > { %276 = vst.msk [vmem:[%s1619_s30 + $0x8] sm:$0xff] %vm274_vm2, %v1414_v12  ;;  %275 = vst.msk [vmem:[%s1619_s30] sm:$0xff] %vm274_vm2, %v1414_v12  ;;  %s1077_s18 = sshll.u32 %s1399_s15, 4  ;;  %s902_s28 = sshll.u32 %s267_s7, 4  ;;  %s903_s28 = int_to_ptr.vmem [resolvable:$true] %s902_s28 }
  0x5d   : > { %277 = vst.msk [vmem:[%s1619_s30 + $0x10] sm:$0xff] %vm274_vm2, %v1414_v12  ;;  %278 = vst.msk [vmem:[%s1619_s30 + $0x18] sm:$0xff] %vm274_vm2, %v1414_v12  ;;  %s1654_s21 = scalar_lea.hbm %s1745_s3, %s1077_s18  ;;  %s871_s8 = scalar_lea.sflag [#allocation9], %s1593_s23 }
  0x5e   : > { %279 = vst [vmem:[%s267_s7] sm:$0x1] %v1414_v12  ;;  %s1289_s10 = scalar_lea.vmem %s903_s28, 16  ;;  %p1758_p0 = scmp.ne.s32.totalorder %s1750_s25, 0 }
  0x5f   : > { %p1290_p8 = scmp.ne.s32.totalorder %s903_s28, %s1289_s10  ;;  %s1415_s5 = smov [#allocation8]  }
  0x60   : > { %s1293_s9 = sshll.u32 %s1415_s5, 4  ;;  %s1294_s9 = int_to_ptr.vmem [resolvable:$false] %s1293_s9 }
  0x61   : > { %p1291_p7 = pnand %p1290_p8, %p1758_p0  ;;  %s1295_s22 = scalar_lea.vmem %s1294_s9, 32 }
  0x62   : > { %p1296_p10 = scmp.lt.s32.totalorder %s903_s28, %s1294_s9  ;;  %p1297_p12 = scmp.lt.s32.totalorder %s1295_s22, %s1289_s10 }
  0x63   : > { %p1292_p4 = pneg %p1291_p7 }
  0x64   : > { %p1298_p1 = por %p1297_p12, %p1296_p10 }
  0x65   : > { %v1228_v4 = vpop.eup %1227  ;;  %v287_v36 = vld [vmem:[%s267_s7] sm:$0x1] }
  0x66   : > { %v1608_v5 = vsel %vm282_vm1, %v283_v3, %v1228_v4  ;;  %p1299_p2 = pnand %p1298_p1, %p1292_p4 }
  0x67   : > { %580 = vrot.lane.b32.xlu0 %v1608_v5, %s1411_s11  ;;  %720 = vrot.lane.b32.xlu1 %v1608_v5, %s1412_s24  ;;  %v289_v29 = vsel %vm288_vm0, %v1608_v5, 0.0 }
  0x68   : > { %v290_v30 = vrot.slane %v289_v29, 4 }
  0x6a   : > { %v291_v31 = vadd.f32 %v290_v30, %v289_v29 }
  0x6b   : > { %440 = vrot.lane.b32.xlu0 %v1608_v5, %s1413_s4  ;;  %755 = vrot.lane.b32.xlu1 %v281_v1, %s1412_s24 }
  0x6c   : > { %v292_v32 = vrot.slane %v291_v31, 2 }
  0x6e   : > { %v293_v33 = vadd.f32 %v292_v32, %v291_v31 }
  0x6f   : > { %475 = vrot.lane.b32.xlu0 %v281_v1, %s1413_s4 }
  0x70   : > { %v294_v34 = vrot.slane %v293_v33, 1 }
  0x72   : > { %v295_v35 = vadd.f32 %v294_v34, %v293_v33 }
  0x74   : > { %v296_v37 = vadd.f32 %v295_v35, %v287_v36 }
  0x76   : > { %297 = vst [vmem:[%s267_s7] sm:$0x1] %v296_v37 }
  0x8d   : > { %302 = vxpose.xlu0.b32.start.end [1/1] (short) (narrow) %v1608_v5, 32 }
  0xcc   : > { %v616_v6 = vpop.permute.xlu1 %615 }
  0xcd   : > { %1117 = vmatprep.subr.msk.mxu0 %vm288_vm0, %v616_v6 }
  0xce   : > { %1118 = vmatpush3.msk.msra.mxu0 %vm288_vm0, %v616_v6 }
  0xd9   : > { %v581_v7 = vpop.permute.xlu0 %580  ;;  %v721_v8 = vpop.permute.xlu1 %720 }
  0xda   : > { %583 = vxpose.xlu1.b32.start.end [1/1] (short) (narrow) %v581_v7, 32 }
  0xdd   : > { %v441_v9 = vpop.permute.xlu0 %440  ;;  %v756_v10 = vpop.permute.xlu1 %755 }
  0xde   : > { %443 = vxpose.xlu0.b32.start.end [1/1] (short) (narrow) %v441_v9, 32  ;;  %1125 = vmatprep.subr.msk.mxu0 %vm288_vm0, %v756_v10 }
  0xe1   : > { %v476_v11 = vpop.permute.xlu0 %475 }
  0xe2   : > { %1109 = vmatprep.subr.msk.mxu1 %vm288_vm0, %v476_v11 }
  0xe7   : > { %723 = vxpose.xlu1.b32.start.end [1/1] (short) (narrow) %v721_v8, 32 }
 0x10d   : > { %v318_v13 = vpop.trf.xlu0 }
 0x10e   : > { %1103 = vmatprep.mubr.msk.f32.mxu1 %vm334_vm3, %v318_v13 }
 0x111   : > { %v319_v14 = vpop.trf.xlu0 }
 0x112   : > { %1104 = vmatmul.mubr.msk.f32.vlgmr.msra.gmra.mrb[0].mxu1 %vm334_vm3, %v319_v14 }
 0x113   : > { %1110 = vmatpush3.msk.msra.mxu1 %vm288_vm0, %v476_v11 }
 0x115   : > { %v320_v15 = vpop.trf.xlu0 }
 0x116   : > { %1106 = vmatprep.mubr.msk.f32.mxu1 %vm334_vm3, %v320_v15 }
 0x119   : > { %v321_v16 = vpop.trf.xlu0 }
 0x11a   : > { %1107 = vmatmul.mubr.msk.f32.gmra.mrb[2].mxu1 %vm334_vm3, %v321_v16 }
 0x15a   : > { %v599_v17 = vpop.trf.xlu1 }
 0x15b   : > { %1119 = vmatprep.mubr.msk.f32.mxu0 %vm334_vm3, %v599_v17 }
 0x15e   : > { %v600_v18 = vpop.trf.xlu1  ;;  %v459_v19 = vpop.trf.xlu0 }
 0x15f   : > { %1120 = vmatmul.mubr.msk.f32.vlgmr.msra.gmra.mrb[0].mxu0 %vm334_vm3, %v600_v18  ;;  %1111 = vmatprep.mubr.msk.f32.mxu1 %vm334_vm3, %v459_v19 }
 0x160   : > { %1126 = vmatpush3.msk.msra.mxu0 %vm288_vm0, %v756_v10 }
 0x162   : > { %v601_v20 = vpop.trf.xlu1  ;;  %v460_v21 = vpop.trf.xlu0 }
 0x163   : > { %1112 = vmatmul.mubr.msk.f32.vlgmr.msra.gmra.mrb[0].mxu1 %vm334_vm3, %v460_v21  ;;  %1122 = vmatprep.mubr.msk.f32.mxu0 %vm334_vm3, %v601_v20 }
 0x166   : > { %v602_v22 = vpop.trf.xlu1  ;;  %v461_v23 = vpop.trf.xlu0 }
 0x167   : > { %1123 = vmatmul.mubr.msk.f32.gmra.mrb[2].mxu0 %vm334_vm3, %v602_v22  ;;  %1114 = vmatprep.mubr.msk.f32.mxu1 %vm334_vm3, %v461_v23 }
 0x16a   : > { %v739_v24 = vpop.trf.xlu1  ;;  %v462_v25 = vpop.trf.xlu0 }
 0x16b   : > { %1115 = vmatmul.mubr.msk.f32.gmra.mrb[2].mxu1 %vm334_vm3, %v462_v25  ;;  %1127 = vmatprep.mubr.msk.f32.mxu0 %vm334_vm3, %v739_v24 }
 0x16e   : > { %v740_v26 = vpop.trf.xlu1 }
 0x16f   : > { %1128 = vmatmul.mubr.msk.f32.vlgmr.msra.gmra.mrb[0].mxu0 %vm334_vm3, %v740_v26 }
 0x172   : > { %v741_v27 = vpop.trf.xlu1 }
 0x173   : > { %1130 = vmatprep.mubr.msk.f32.mxu0 %vm334_vm3, %v741_v27 }
 0x176   : > { %v742_v28 = vpop.trf.xlu1 }
 0x177   : > { %1131 = vmatmul.mubr.msk.f32.gmra.mrb[2].mxu0 %vm334_vm3, %v742_v28 }
 0x178   : > { %1302 = shalt.err (!%p1299_p2)
}
 0x179   : > { %s1303_s11 = scalar_lea.hbm %s1654_s21, 16  ;;  %s1307_s6 = scalar_lea.hbm %s1745_s3, 32 }
 0x17a   : > { %p1304_p9 = scmp.ne.s32.totalorder %s1654_s21, %s1303_s11  ;;  %p1308_p6 = scmp.lt.u32.totalorder %s1654_s21, %s1745_s3 }
 0x17b   : > { %p1309_p13 = scmp.lt.u32.totalorder %s1307_s6, %s1303_s11  ;;  %p1311_p8 = scmp.lt.u32.totalorder %s1303_s11, %s1654_s21 }
 0x17c   : > { %p1305_p11 = pnand %p1304_p9, %p1758_p0 }
 0x17d   : > { %p1310_p5 = por %p1309_p13, %p1308_p6 }
 0x17e   : > { %p1306_p3 = pneg %p1305_p11 }
 0x17f   : > { %p1312_p7 = por %p1311_p8, %p1310_p5 }
 0x181   : > { %p1313_p4 = pnand %p1312_p7, %p1306_p3 }
 0x183   : > { %1316 = shalt.err (!%p1313_p4)
}
 0x184   : > { %1154 = dma.vmem_to_hbm [thread:$0]  (%p1758_p0), %s903_s28, 16, %s1654_s21, %s871_s8   ;;  %v299_v40 = vld [vmem:[%s1619_s30 + $0x8] sm:$0xff]  ;;  %v298_v42 = vld [vmem:[%s1619_s30] sm:$0xff]  ;;  %v301_v50 = vld [vmem:[%s1619_s30 + $0x18] sm:$0xff] }
 0x185   : > { %v300_v51 = vld [vmem:[%s1619_s30 + $0x10] sm:$0xff]  ;;  %s1080_s28 = sshll.u32 %s1399_s15, 9  ;;  %s885_s29 = sshll.u32 %s1619_s30, 4  ;;  %s1689_s29 = int_to_ptr.vmem [resolvable:$true] %s885_s29 }
 0x186   : > { %s1687_s8 = scalar_lea.hbm %s1744_s2, %s1080_s28  ;;  %s866_s15 = scalar_lea.sflag [#allocation4], %s1593_s23 }
 0x187   : > { %s1317_s10 = scalar_lea.vmem %s1689_s29, 512  ;;  %s1416_s5 = smov [#allocation7]  }
 0x188   : > { %p1318_p10 = scmp.ne.s32.totalorder %s1689_s29, %s1317_s10  ;;  %s1321_s9 = sshll.u32 %s1416_s5, 4  ;;  %s1322_s9 = int_to_ptr.vmem [resolvable:$false] %s1321_s9 }
 0x189   : > { %s1323_s22 = scalar_lea.vmem %s1322_s9, 1024  ;;  %p1324_p2 = scmp.lt.s32.totalorder %s1689_s29, %s1322_s9 }
 0x18a   : > { %p1319_p12 = pnand %p1318_p10, %p1758_p0  ;;  %p1325_p9 = scmp.lt.s32.totalorder %s1323_s22, %s1317_s10 }
 0x18c   : > { %p1320_p1 = pneg %p1319_p12  ;;  %p1326_p11 = por %p1325_p9, %p1324_p2 }
 0x18e   : > { %p1327_p3 = pnand %p1326_p11, %p1320_p1 }
 0x236   : > { %v1113_v38 = vpop.f32.mrb[0].mxu1 }
 0x237   : > { %v557_v39 = vpop.f32.mrb[1].mxu1  ;;  %v1133_v44 = vadd.f32 %v1113_v38, %v299_v40 }
 0x238   : > { %v1135_v45 = vadd.f32 %v557_v39, %v298_v42 }
 0x23e   : > { %v1116_v41 = vpop.f32.mrb[2].mxu1 }
 0x23f   : > { %v567_v43 = vpop.f32.mrb[3].mxu1  ;;  %v1137_v52 = vadd.f32 %v1116_v41, %v301_v50 }
 0x240   : > { %v1139_v53 = vadd.f32 %v567_v43, %v300_v51 }
 0x242   : > { %v1129_v46 = vpop.f32.mrb[0].mxu0 }
 0x243   : > { %v1134_v47 = vadd.f32 %v1133_v44, %v1129_v46  ;;  %v837_v48 = vpop.f32.mrb[1].mxu0 }
 0x244   : > { %v1136_v49 = vadd.f32 %v1135_v45, %v837_v48 }
 0x245   : > { %862 = vst.msk [vmem:[%s1619_s30 + $0x8] sm:$0xff] %vm274_vm2, %v1134_v47 }
 0x246   : > { %861 = vst.msk [vmem:[%s1619_s30] sm:$0xff] %vm274_vm2, %v1136_v49 }
 0x24a   : > { %v1132_v54 = vpop.f32.mrb[2].mxu0 }
 0x24b   : > { %v1138_v55 = vadd.f32 %v1137_v52, %v1132_v54  ;;  %v847_v56 = vpop.f32.mrb[3].mxu0 }
 0x24c   : > { %v1140_v57 = vadd.f32 %v1139_v53, %v847_v56 }
 0x24d   : > { %864 = vst.msk [vmem:[%s1619_s30 + $0x18] sm:$0xff] %vm274_vm2, %v1138_v55 }
 0x24e   : > { %863 = vst.msk [vmem:[%s1619_s30 + $0x10] sm:$0xff] %vm274_vm2, %v1140_v57 }
 0x24f   : > { %1330 = shalt.err (!%p1327_p3)
}
 0x250   : > { %s1331_s30 = scalar_lea.hbm %s1687_s8, 512  ;;  %s1335_s4 = scalar_lea.hbm %s1744_s2, 1024 }
 0x251   : > { %p1332_p6 = scmp.ne.s32.totalorder %s1687_s8, %s1331_s30  ;;  %p1336_p8 = scmp.lt.u32.totalorder %s1687_s8, %s1744_s2 }
 0x252   : > { %p1337_p7 = scmp.lt.u32.totalorder %s1335_s4, %s1331_s30  ;;  %p1339_p10 = scmp.lt.u32.totalorder %s1331_s30, %s1687_s8 }
 0x253   : > { %p1333_p13 = pnand %p1332_p6, %p1758_p0 }
 0x254   : > { %p1338_p4 = por %p1337_p7, %p1336_p8 }
 0x255   : > { %p1334_p5 = pneg %p1333_p13 }
 0x256   : > { %p1340_p12 = por %p1339_p10, %p1338_p4 }
 0x258   : > { %p1341_p1 = pnand %p1340_p12, %p1334_p5 }
 0x25a   : > { %1344 = shalt.err (!%p1341_p1)
}
 0x25b   : > { %s1417_s18 = smov 128   ;;  %s1418_s28 = smov 8  }
 0x25c   : > { %1153 = dma.vmem_to_hbm [thread:$0]  (%p1758_p0), %s1689_s29, 512, %s1687_s8, %s866_s15, %s1417_s18, %s1417_s18, %s1418_s28  }
 0x25d PF: > { %s914_s19 = sand.u32 1, %s1387_s12   ;;  %p1759_p2 = scmp.ne.s32.totalorder %s1751_s27, 0 }
 0x25e   : > { %p1760_p9 = scmp.ge.s32.totalorder %s1407_s17, 2  ;;  %s915_s21 = scalar_lea.sflag [#allocation4], %s914_s19 }
 0x260   : > { %p1165_p11 = pnand %p1760_p9, %p1759_p2 }
 0x262   : > { %1378 = dma.done.wait (!%p1165_p11), %s915_s21, 512  }
 0x263   : > { %1380 = vsyncadd (!%p1165_p11), %s915_s21, 4294966784  ;;  %s924_s10 = scalar_lea.sflag [#allocation9], %s914_s19 }
 0x264   : > { %1382 = dma.done.wait (!%p1165_p11), %s924_s10, 16  }
 0x265   : > { %1384 = vsyncadd (!%p1165_p11), %s924_s10, 4294967280  ;;  %s26_s17 = sadd.s32 1, %s1407_s17   ;;  %s1761_s12 = smov %s1391_s13 }
 0x266   : > { %p23_p3 = scmp.ge.s32.totalorder %s26_s17, 4   ;;  %s1762_s13 = smov %s1395_s14 }
 0x267   : > { %s1763_s14 = smov %s1495_s26  ;;  %s1764_s15 = smov %s1403_s16 }
 0x268   : > { %s1765_s16 = smov %s1767_s20  ;;  %25 = sbr.rel (!%p23_p3) target bundleno = 10 (0xa), region = 107 }
 0x26f   :  { %928 = vsyncpa [#allocation3], 1 }
 0x270   :  { %930 = vsyncpa [#allocation3 + $0x1], 1 }
 0x271   :  { %931 = vsyncpa [#allocation6], 1 }
 0x272   :  { %933 = vsyncpa [#allocation6 + $0x1], 1 }
 0x273   :  { %934 = vsyncpa [#allocation4], 1 }
 0x274   :  { %936 = vsyncpa [#allocation4 + $0x1], 1 }
 0x275   :  { %937 = vsyncpa [#allocation9], 1 }
 0x276   :  { %939 = vsyncpa [#allocation9 + $0x1], 1 }

</bundles_post_ra>
